<compile_context>
chip_gen: v5e
topology: v5e:2x2
jax: 0.10.0
libtpu: 0.0.40
codegen_flags: <defaults>
</compile_context>

<pallas_src>
import functools

import jax
import jax.numpy as jnp
from jax.experimental import pallas as pl
from jax.experimental.pallas import tpu as pltpu


_LANE_CANDIDATES = (1024, 512, 256, 128)   # widest lane-dense 2-D view that divides size
_MAX_DMA_IN_FLIGHT = 4                     # small ring of concurrent chunk DMAs


def _infer_shape(total, target_shape):
    """torch-style shape inference (a single -1 entry is allowed)."""
    target_shape = tuple(int(d) for d in target_shape)
    if -1 in target_shape:
        known = 1
        for d in target_shape:
            if d != -1:
                known *= d
        target_shape = tuple(total // known if d == -1 else d for d in target_shape)
    return target_shape


def _hbm_copy_kernel(x_hbm, o_hbm, sems, *, row_splits):
    """HBM -> HBM copy: issue all chunk DMAs (2-4 in flight), then wait.

    No data ever stages through VMEM; the body has no vector work at all.
    `row_splits` is a static tuple of (start, size) row ranges.
    """
    copies = []
    for i, (start, size) in enumerate(row_splits):
        cp = pltpu.make_async_copy(
            x_hbm.at[pl.ds(start, size), :],
            o_hbm.at[pl.ds(start, size), :],
            sems.at[i],
        )
        cp.start()
        copies.append(cp)
    for cp in copies:
        cp.wait()


def _pallas_hbm_copy_2d(flat2d):
    """Copy a (rows, lanes) slab HBM->HBM via DMA engines (no VMEM staging)."""
    rows, lanes = flat2d.shape
    itemsize = jnp.dtype(flat2d.dtype).itemsize

    # Static chunking: a few disjoint row ranges so several DMA engines work
    # concurrently; the ragged last chunk is just a smaller static slice.
    n_chunks = max(1, min(_MAX_DMA_IN_FLIGHT, rows))
    chunk = pl.cdiv(rows, n_chunks)
    row_splits = []
    start = 0
    while start < rows:
        size = min(chunk, rows - start)
        row_splits.append((int(start), int(size)))
        start += size

    return pl.pallas_call(
        functools.partial(_hbm_copy_kernel, row_splits=tuple(row_splits)),
        out_shape=jax.ShapeDtypeStruct((rows, lanes), flat2d.dtype),
        in_specs=[pl.BlockSpec(memory_space=pl.ANY)],    # raw HBM ref, no auto-DMA
        out_specs=pl.BlockSpec(memory_space=pl.ANY),     # raw HBM ref, no auto-DMA
        scratch_shapes=[pltpu.SemaphoreType.DMA((len(row_splits),))],
        cost_estimate=pl.CostEstimate(
            flops=0,
            transcendentals=0,
            bytes_accessed=2 * rows * lanes * itemsize,
        ),
    )(flat2d)


def reshape_forward(x, target_shape, *, materialize=False):
    """Pallas-backed equivalent of `Reshape(*target_shape)(x)` in PyTorch.

    Semantics match torch.Tensor.reshape on a contiguous tensor: row-major
    flatten, then re-view as `target_shape`.

    materialize=False (default): metadata-only reshape, zero HBM traffic
    (this is the optimal path -- the PyTorch module is a view op).
    materialize=True: additionally produce a fresh buffer via an HBM->HBM
    DMA copy kernel (pure data movement, no VMEM staging).
    """
    total = x.size
    shape = _infer_shape(total, target_shape)

    if not materialize or total == 0:
        # Top performance-review item: do NOT route a contiguous reshape
        # through a copy kernel -- it is metadata-only.
        return jnp.reshape(x, shape)

    # Lane-dense 2-D view for an efficient contiguous DMA.
    lanes = next((l for l in _LANE_CANDIDATES if total % l == 0), None)
    if lanes is None:
        # TODO(synk): non-128-aligned sizes are not routed through the DMA
        # copy kernel; the metadata-only reshape is used instead (which is
        # optimal anyway for this module).
        return jnp.reshape(x, shape)

    rows = total // lanes
    flat2d = x.reshape(rows, lanes)          # metadata-only (contiguous input)
    copied = _pallas_hbm_copy_2d(flat2d)
    return copied.reshape(shape)             # metadata-only re-view


if __name__ == "__main__":
    key = jax.random.PRNGKey(0)

    # Example consistent with betavae usage: flatten conv features.
    # input layout: NCHW, (batch=2, channels=4, H=16, W=16) -> (-1, 1024)
    x = jax.random.normal(key, (2, 4, 16, 16), dtype=jnp.float32)
    target_shape = (-1, 4 * 16 * 16)
    ref = jnp.reshape(x, target_shape)

    # 1) Default (optimal) path: metadata-only reshape.
    y = jax.block_until_ready(reshape_forward(x, target_shape))
    assert y.shape == ref.shape and y.dtype == ref.dtype
    assert bool(jnp.all(y == ref))

    # 2) Pallas HBM->HBM DMA copy path, exercised once for correctness.
    y_k = jax.block_until_ready(reshape_forward(x, target_shape, materialize=True))
    assert y_k.shape == ref.shape and y_k.dtype == ref.dtype
    assert bool(jnp.all(y_k == ref))

    # 3) Multi-chunk DMA path (more rows), bf16.
    x2 = jax.random.normal(key, (4, 32, 16, 16), dtype=jnp.bfloat16)
    ref2 = jnp.reshape(x2, (4, -1))
    y2 = jax.block_until_ready(reshape_forward(x2, (4, -1), materialize=True))
    assert y2.shape == ref2.shape and bool(jnp.all(y2 == ref2))

    print("KERNEL_OK")
</pallas_src>

<mosaic_0001>
module attributes {stable_mosaic.version = 11 : i64} {
  func.func @_hbm_copy_kernel(%arg0: memref<2x1024xf32, #tpu.memory_space<any>>, %arg1: memref<2x1024xf32, #tpu.memory_space<any>>, %arg2: memref<2x!tpu.dma_semaphore, #tpu.memory_space<semaphore_mem>>) attributes {dimension_semantics = [], scalar_prefetch = 0 : i64, scratch_operands = 1 : i64, tpu.core_type = #tpu.core_type<tc>} {
    %c0_i32 = arith.constant 0 : i32
    %c0_i32_0 = arith.constant 0 : i32
    %c0_i32_1 = arith.constant 0 : i32
    %0 = tpu.memref_slice %arg0[%c0_i32_0, %c0_i32_1] : memref<2x1024xf32, #tpu.memory_space<any>> -> memref<1x1024xf32, #tpu.memory_space<any>>
    %c0_i32_2 = arith.constant 0 : i32
    %c0_i32_3 = arith.constant 0 : i32
    %1 = tpu.memref_slice %arg1[%c0_i32_2, %c0_i32_3] : memref<2x1024xf32, #tpu.memory_space<any>> -> memref<1x1024xf32, #tpu.memory_space<any>>
    %2 = tpu.memref_slice %arg2[%c0_i32] : memref<2x!tpu.dma_semaphore, #tpu.memory_space<semaphore_mem>> -> memref<1x!tpu.dma_semaphore, #tpu.memory_space<semaphore_mem>>
    %3 = tpu.memref_squeeze %2 : memref<1x!tpu.dma_semaphore, #tpu.memory_space<semaphore_mem>> -> memref<!tpu.dma_semaphore, #tpu.memory_space<semaphore_mem>>
    tpu.enqueue_dma source(%0 : memref<1x1024xf32, #tpu.memory_space<any>>) target(%1 : memref<1x1024xf32, #tpu.memory_space<any>>) target_semaphore(%3 : memref<!tpu.dma_semaphore, #tpu.memory_space<semaphore_mem>>)
    %c1_i32 = arith.constant 1 : i32
    %c1_i32_4 = arith.constant 1 : i32
    %c0_i32_5 = arith.constant 0 : i32
    %4 = tpu.memref_slice %arg0[%c1_i32_4, %c0_i32_5] : memref<2x1024xf32, #tpu.memory_space<any>> -> memref<1x1024xf32, #tpu.memory_space<any>>
    %c1_i32_6 = arith.constant 1 : i32
    %c0_i32_7 = arith.constant 0 : i32
    %5 = tpu.memref_slice %arg1[%c1_i32_6, %c0_i32_7] : memref<2x1024xf32, #tpu.memory_space<any>> -> memref<1x1024xf32, #tpu.memory_space<any>>
    %6 = tpu.memref_slice %arg2[%c1_i32] : memref<2x!tpu.dma_semaphore, #tpu.memory_space<semaphore_mem>> -> memref<1x!tpu.dma_semaphore, #tpu.memory_space<semaphore_mem>>
    %7 = tpu.memref_squeeze %6 : memref<1x!tpu.dma_semaphore, #tpu.memory_space<semaphore_mem>> -> memref<!tpu.dma_semaphore, #tpu.memory_space<semaphore_mem>>
    tpu.enqueue_dma source(%4 : memref<1x1024xf32, #tpu.memory_space<any>>) target(%5 : memref<1x1024xf32, #tpu.memory_space<any>>) target_semaphore(%7 : memref<!tpu.dma_semaphore, #tpu.memory_space<semaphore_mem>>)
    %c0_i32_8 = arith.constant 0 : i32
    %c0_i32_9 = arith.constant 0 : i32
    %c0_i32_10 = arith.constant 0 : i32
    %8 = tpu.memref_slice %arg0[%c0_i32_9, %c0_i32_10] : memref<2x1024xf32, #tpu.memory_space<any>> -> memref<1x1024xf32, #tpu.memory_space<any>>
    %c0_i32_11 = arith.constant 0 : i32
    %c0_i32_12 = arith.constant 0 : i32
    %9 = tpu.memref_slice %arg1[%c0_i32_11, %c0_i32_12] : memref<2x1024xf32, #tpu.memory_space<any>> -> memref<1x1024xf32, #tpu.memory_space<any>>
    %10 = tpu.memref_slice %arg2[%c0_i32_8] : memref<2x!tpu.dma_semaphore, #tpu.memory_space<semaphore_mem>> -> memref<1x!tpu.dma_semaphore, #tpu.memory_space<semaphore_mem>>
    %11 = tpu.memref_squeeze %10 : memref<1x!tpu.dma_semaphore, #tpu.memory_space<semaphore_mem>> -> memref<!tpu.dma_semaphore, #tpu.memory_space<semaphore_mem>>
    tpu.wait_dma2 semaphore(%11 : memref<!tpu.dma_semaphore, #tpu.memory_space<semaphore_mem>>) src(%8 : memref<1x1024xf32, #tpu.memory_space<any>>) dst(%9 : memref<1x1024xf32, #tpu.memory_space<any>>)
    %c1_i32_13 = arith.constant 1 : i32
    %c1_i32_14 = arith.constant 1 : i32
    %c0_i32_15 = arith.constant 0 : i32
    %12 = tpu.memref_slice %arg0[%c1_i32_14, %c0_i32_15] : memref<2x1024xf32, #tpu.memory_space<any>> -> memref<1x1024xf32, #tpu.memory_space<any>>
    %c1_i32_16 = arith.constant 1 : i32
    %c0_i32_17 = arith.constant 0 : i32
    %13 = tpu.memref_slice %arg1[%c1_i32_16, %c0_i32_17] : memref<2x1024xf32, #tpu.memory_space<any>> -> memref<1x1024xf32, #tpu.memory_space<any>>
    %14 = tpu.memref_slice %arg2[%c1_i32_13] : memref<2x!tpu.dma_semaphore, #tpu.memory_space<semaphore_mem>> -> memref<1x!tpu.dma_semaphore, #tpu.memory_space<semaphore_mem>>
    %15 = tpu.memref_squeeze %14 : memref<1x!tpu.dma_semaphore, #tpu.memory_space<semaphore_mem>> -> memref<!tpu.dma_semaphore, #tpu.memory_space<semaphore_mem>>
    tpu.wait_dma2 semaphore(%15 : memref<!tpu.dma_semaphore, #tpu.memory_space<semaphore_mem>>) src(%12 : memref<1x1024xf32, #tpu.memory_space<any>>) dst(%13 : memref<1x1024xf32, #tpu.memory_space<any>>)
    return
  }
}

</mosaic_0001>

<bundles_post_ra>
// kernel: tpu_custom_call.1
= control target key start
LH: loop header
LB: loop body
LE: loop exit
PB: predicated region body
PF: predicated region fallthrough
CT: control target
= control target key end

     0   :  { %s76_s12 = smov 32   ;;  %s77_s13 = smov 1   ;;  %s105_s0 = inlined_call_operand.hbm [shape: f32[2,1024], index: 0, kind: input, shape index: {}]   ;;  %s106_s1 = inlined_call_operand.hbm [shape: f32[2,1024], index: 1, kind: output, shape index: {}]  }
   0x1   :  { %s10_s8 = sshll.u32 %s105_s0, 4  ;;  %s12_s11 = sshll.u32 %s106_s1, 4  ;;  %s11_s8 = int_to_ptr.hbm [resolvable:$true] %s10_s8  ;;  %s13_s11 = int_to_ptr.hbm [resolvable:$true] %s12_s11 }
   0x2   :  { %17 = sst [smem:[#allocation4]] %s76_s12  ;;  %s78_s14 = smov [#allocation2]  }
   0x3   :  { %19 = sst [smem:[#allocation4 + $0x1]] %s76_s12  ;;  %s79_s15 = smov [#allocation3]  }
   0x4   :  { %21 = sst [smem:[#allocation4 + $0x2]] %s77_s13  ;;  %s80_s16 = smov 0  }
   0x5   :  { %23 = dma.general %s11_s8, 128, %s13_s11, %s78_s14, %s79_s15, [#allocation4], %s80_s16, 0  }
   0x6   :  { %38 = sst [smem:[#allocation6]] %s76_s12  ;;  %s24_s19 = scalar_lea.hbm %s105_s0, 1 }
   0x7   :  { %40 = sst [smem:[#allocation6 + $0x1]] %s76_s12  ;;  %s25_s22 = scalar_lea.hbm %s106_s1, 1 }
   0x8   :  { %42 = sst [smem:[#allocation6 + $0x2]] %s77_s13  ;;  %s31_s23 = sshll.u32 %s24_s19, 4  ;;  %s32_s23 = int_to_ptr.hbm [resolvable:$true] %s31_s23 }
   0x9   :  { %s33_s24 = sshll.u32 %s25_s22, 4  ;;  %s81_s25 = smov [#allocation2 + $0x1]   ;;  %s34_s24 = int_to_ptr.hbm [resolvable:$true] %s33_s24 }
   0xa   :  { %s82_s26 = smov [#allocation5]  }
   0xb   :  { %44 = dma.general %s32_s23, 128, %s34_s24, %s81_s25, %s82_s26, [#allocation6], %s80_s16, 0  }
   0xc   :  { %72 = dma.done.wait [#allocation2], 128 }
   0xd   :  { %73 = vsyncadd [#allocation2], 4294967168 }
   0xe   :  { %74 = dma.done.wait [#allocation2 + $0x1], 128 }
   0xf   :  { %75 = vsyncadd [#allocation2 + $0x1], 4294967168 }
  0x10   :  { %50 = vsyncmov [#allocation2] }
  0x13   :  { %s51_s27 = vpop.sfrf %50 }
  0x14   :  { %p63_p0 = scmp.ne.s32.totalorder %s51_s27, 0 }
  0x16   :  { %55 = shalt.err (%p63_p0)  }
  0x17   :  { %57 = vsyncmov [#allocation2 + $0x1] }
  0x1a   :  { %s58_s0 = vpop.sfrf %57 }
  0x1b   :  { %p64_p1 = scmp.ne.s32.totalorder %s58_s0, 0 }
  0x1d   :  { %62 = shalt.err (%p64_p1)  }

</bundles_post_ra>
